<compile_context>
chip_gen: v7x
topology: tpu7x:2x2x1
jax: 0.10.0
libtpu: 0.0.40
codegen_flags: <defaults>
</compile_context>

<pallas_src>
import functools

import jax
import jax.numpy as jnp
from jax.experimental import pallas as pl
from jax.experimental.pallas import tpu as pltpu


def _round_up(x: int, m: int) -> int:
    return ((x + m - 1) // m) * m


def _iou_kernel(lhs_ref, rhs_t_ref, out_ref):
    # lhs_ref:   (tn, 2)  rows of [w, h]
    # rhs_t_ref: (2, tm)  row 0 = widths, row 1 = heights
    wl = lhs_ref[:, 0:1]          # (tn, 1)
    hl = lhs_ref[:, 1:2]          # (tn, 1)
    wr = rhs_t_ref[0:1, :]        # (1, tm)
    hr = rhs_t_ref[1:2, :]        # (1, tm)

    # Hoisted per-row / per-column areas (cheap, pre-broadcast).
    area_l = wl * hl              # (tn, 1)
    area_r = wr * hr              # (1, tm)

    inter = jnp.minimum(wl, wr) * jnp.minimum(hl, hr)      # (tn, tm)
    union = (area_l + area_r) - inter                      # (tn, tm)

    # EUP approx reciprocal (separate issue slot) instead of exact divide.
    inv_union = pl.reciprocal(union, approx=True)
    out_ref[...] = inter * inv_union + jnp.asarray(1e-16, out_ref.dtype)


@functools.partial(jax.jit, static_argnames=("tile_n", "tile_m"))
def iou_distance(lhs: jax.Array, rhs: jax.Array, *,
                 tile_n: int = 512, tile_m: int = 1024) -> jax.Array:
    """Pallas equivalent of IouDistance.forward.

    Args:
        lhs: (N, 2) array of [w, h]
        rhs: (M, 2) array of [w, h]
    Returns:
        (N, M) array of IoU + 1e-16 (same as the PyTorch module).
    """
    assert lhs.shape[1:] == rhs.shape[1:]
    assert lhs.shape[-1] >= 2 and lhs.ndim == 2
    lhs2 = lhs[:, :2]
    rhs2 = rhs[:, :2]

    N, M = lhs2.shape[0], rhs2.shape[0]
    dtype = lhs2.dtype

    # Lane (M) tile: multiple of 128; sublane (N) tile: multiple of 8.
    tm = min(tile_m, _round_up(M, 128))
    # Keep block area ~constant so small-M problems still get big N tiles.
    tn_target = min(max(tile_n, (tile_n * tile_m) // tm), 4096)
    tn = min(_round_up(tn_target, 8), _round_up(N, 8))

    grid = (pl.cdiv(N, tn), pl.cdiv(M, tm))
    n_pad = grid[0] * tn
    m_pad = grid[1] * tm

    # Pad only the tiny inputs (value 1.0 keeps padded math finite); the big
    # (N, M) output stays exact-shape and edge blocks use partial writeback.
    lhs_p = lhs2 if n_pad == N else jnp.pad(
        lhs2, ((0, n_pad - N), (0, 0)), constant_values=1.0)
    rhs_p = rhs2 if m_pad == M else jnp.pad(
        rhs2, ((0, m_pad - M), (0, 0)), constant_values=1.0)
    rhs_t = rhs_p.T  # (2, m_pad): lane-friendly layout, tiny transpose.

    return pl.pallas_call(
        _iou_kernel,
        out_shape=jax.ShapeDtypeStruct((N, M), dtype),
        grid=grid,
        in_specs=[
            pl.BlockSpec((tn, 2), lambda i, j: (i, 0)),
            pl.BlockSpec((2, tm), lambda i, j: (0, j)),
        ],
        out_specs=pl.BlockSpec((tn, tm), lambda i, j: (i, j)),
        compiler_params=pltpu.CompilerParams(
            dimension_semantics=("parallel", "parallel")),
    )(lhs_p, rhs_t)


def _reference_loop(lhs: jax.Array, rhs: jax.Array) -> jax.Array:
    # Pure-JAX reference mirroring the PyTorch loop exactly.
    res = []
    for j in range(rhs.shape[0]):
        target = rhs[j]
        inter = jnp.minimum(lhs[:, 0], target[0]) * jnp.minimum(lhs[:, 1], target[1])
        union = lhs[:, 0] * lhs[:, 1] + target[0] * target[1] - inter
        res.append(inter / union + 1e-16)
    return jnp.stack(res).T  # (M, N) -> (N, M)


def _reference_vec(lhs: jax.Array, rhs: jax.Array) -> jax.Array:
    wl, hl = lhs[:, 0:1], lhs[:, 1:2]
    wr, hr = rhs[None, :, 0], rhs[None, :, 1]
    inter = jnp.minimum(wl, wr) * jnp.minimum(hl, hr)
    union = wl * hl + wr * hr - inter
    return inter / union + 1e-16


if __name__ == "__main__":
    key = jax.random.PRNGKey(0)
    k1, k2, k3, k4 = jax.random.split(key, 4)

    # Small, deterministic positive (w, h) boxes (matches the module's usage).
    lhs = jax.random.uniform(k1, (16, 2), dtype=jnp.float32, minval=0.1, maxval=10.0)
    rhs = jax.random.uniform(k2, (8, 2), dtype=jnp.float32, minval=0.1, maxval=10.0)

    out = jax.block_until_ready(iou_distance(lhs, rhs))
    ref = _reference_loop(lhs, rhs)
    assert out.shape == (16, 8)
    # approx reciprocal -> slightly looser tolerance than exact divide
    assert jnp.allclose(out, ref, rtol=5e-3, atol=1e-6)

    # Larger case exercising a multi-tile grid with ragged edges in both dims
    # (small tiles forced so several partial blocks are produced).
    lhs_b = jax.random.uniform(k3, (1000, 2), dtype=jnp.float32, minval=0.1, maxval=10.0)
    rhs_b = jax.random.uniform(k4, (200, 2), dtype=jnp.float32, minval=0.1, maxval=10.0)
    out_b = jax.block_until_ready(iou_distance(lhs_b, rhs_b, tile_n=256, tile_m=128))
    ref_b = _reference_vec(lhs_b, rhs_b)
    assert out_b.shape == (1000, 200)
    assert jnp.allclose(out_b, ref_b, rtol=5e-3, atol=1e-6)

    # Default (large) tiles on the same ragged shapes.
    out_c = jax.block_until_ready(iou_distance(lhs_b, rhs_b))
    assert out_c.shape == (1000, 200)
    assert jnp.allclose(out_c, ref_b, rtol=5e-3, atol=1e-6)

    print("KERNEL_OK")
</pallas_src>

<mosaic_0001>
module attributes {stable_mosaic.version = 11 : i64} {
  func.func @_iou_kernel(%arg0: i32, %arg1: i32, %arg2: memref<16x2xf32, #tpu.memory_space<vmem>>, %arg3: memref<2x128xf32, #tpu.memory_space<vmem>>, %arg4: memref<16x128xf32, #tpu.memory_space<vmem>>) attributes {dimension_semantics = [#tpu.dimension_semantics<parallel>, #tpu.dimension_semantics<parallel>], iteration_bounds = array<i64: 1, 1>, scalar_prefetch = 0 : i64, scratch_operands = 0 : i64, tpu.core_type = #tpu.core_type<tc>, window_params = [{transform_indices = @transform_0, window_bounds = array<i64: 16, 2>}, {transform_indices = @transform_1, window_bounds = array<i64: 2, 128>}, {transform_indices = @transform_2, window_bounds = array<i64: 16, 128>}]} {
    %c0 = arith.constant 0 : index
    %c0_0 = arith.constant 0 : index
    %0 = vector.load %arg2[%c0, %c0_0] : memref<16x2xf32, #tpu.memory_space<vmem>>, vector<16x1xf32>
    %c0_1 = arith.constant 0 : index
    %c1 = arith.constant 1 : index
    %1 = vector.load %arg2[%c0_1, %c1] : memref<16x2xf32, #tpu.memory_space<vmem>>, vector<16x1xf32>
    %c0_2 = arith.constant 0 : index
    %c0_3 = arith.constant 0 : index
    %2 = vector.load %arg3[%c0_2, %c0_3] : memref<2x128xf32, #tpu.memory_space<vmem>>, vector<1x128xf32>
    %c1_4 = arith.constant 1 : index
    %c0_5 = arith.constant 0 : index
    %3 = vector.load %arg3[%c1_4, %c0_5] : memref<2x128xf32, #tpu.memory_space<vmem>>, vector<1x128xf32>
    %4 = arith.mulf %0, %1 : vector<16x1xf32>
    %5 = arith.mulf %2, %3 : vector<1x128xf32>
    %6 = vector.broadcast %0 : vector<16x1xf32> to vector<16x128xf32>
    %7 = vector.broadcast %2 : vector<1x128xf32> to vector<16x128xf32>
    %8 = arith.minimumf %6, %7 : vector<16x128xf32>
    %9 = vector.broadcast %1 : vector<16x1xf32> to vector<16x128xf32>
    %10 = vector.broadcast %3 : vector<1x128xf32> to vector<16x128xf32>
    %11 = arith.minimumf %9, %10 : vector<16x128xf32>
    %12 = arith.mulf %8, %11 : vector<16x128xf32>
    %13 = vector.broadcast %4 : vector<16x1xf32> to vector<16x128xf32>
    %14 = vector.broadcast %5 : vector<1x128xf32> to vector<16x128xf32>
    %15 = arith.addf %13, %14 : vector<16x128xf32>
    %16 = arith.subf %15, %12 : vector<16x128xf32>
    %17 = tpu.reciprocal %16 {approx = true} : vector<16x128xf32> -> vector<16x128xf32>
    %18 = arith.mulf %12, %17 : vector<16x128xf32>
    %cst = arith.constant 1.000000e-16 : f32
    %19 = vector.broadcast %cst : f32 to vector<16x128xf32>
    %20 = arith.addf %18, %19 : vector<16x128xf32>
    %c0_6 = arith.constant 0 : index
    %c0_7 = arith.constant 0 : index
    %21 = vector.load %arg4[%c0_6, %c0_7] : memref<16x128xf32, #tpu.memory_space<vmem>>, vector<16x128xf32>
    tpu.vector_store %arg4[%c0_6, %c0_7], %20 {strides = array<i32>} : memref<16x128xf32, #tpu.memory_space<vmem>>, vector<16x128xf32>,
    return
  }
  func.func @transform_0(%arg0: i32, %arg1: i32) -> (i32, i32) {
    %c0_i32 = arith.constant 0 : i32
    %c0_i32_0 = arith.constant 0 : i32
    return %arg0, %c0_i32 : i32, i32
  }
  func.func @transform_1(%arg0: i32, %arg1: i32) -> (i32, i32) {
    %c0_i32 = arith.constant 0 : i32
    %c0_i32_0 = arith.constant 0 : i32
    return %c0_i32, %arg1 : i32, i32
  }
  func.func @transform_2(%arg0: i32, %arg1: i32) -> (i32, i32) {
    %c0_i32 = arith.constant 0 : i32
    return %arg0, %arg1 : i32, i32
  }
}

</mosaic_0001>

<bundles_post_ra>
// kernel: iou_distance.1
= control target key start
LH: loop header
LB: loop body
LE: loop exit
PB: predicated region body
PF: predicated region fallthrough
CT: control target
= control target key end

     0   :  { %v98_v1 = vmov 0   ;;  %v99_v2 = vmov 1   ;;  %s100_s11 = smov 127   ;;  %v34_v8 = vlaneseq  ;;  %s134_s0 = inlined_call_operand.vmem [shape: f32[16,2], index: 0, kind: input, shape index: {}]   ;;  %s135_s1 = inlined_call_operand.vmem [shape: f32[2,128], index: 1, kind: input, shape index: {}]   ;;  %s136_s2 = inlined_call_operand.vmem [shape: f32[16,8], index: 2, kind: output, shape index: {}]  }
   0x1   :  { %v11_v0 = vld [vmem:[%s134_s0] sm:$0xff]  ;;  %89 = vset.pattern.permute.xlu1 %v98_v1  ;;  %90 = vset.pattern.permute.xlu0 %v99_v2  ;;  %v12_v3 = vld [vmem:[%s134_s0 + $0x8] sm:$0xff] }
   0x2   :  { %17 = vrot.lane.b32.xlu0 %v11_v0, %s100_s11  ;;  %27 = vperm.xlu1 %89, %v11_v0   ;;  %v35_v10 = vshrl.u32 %v34_v8, 7  ;;  %v13_v12 = vld [vmem:[%s135_s1] sm:$0x1]  ;;  %v14_v14 = vld [vmem:[%s135_s1 + $0x1] sm:$0x1] }
   0x3   :  { %v25_v17 = vmul.f32 %v14_v14, %v13_v12 }
   0x4   :  { %v36_v11 = vsub.s32 0, %v35_v10 }
   0x6   :  { %19 = vrot.lane.b32.xlu0 %v12_v3, %s100_s11  ;;  %31 = vperm.xlu1 %89, %v12_v3   ;;  %v37_v15 = vrot.slane %v13_v12, %v36_v11  ;;  %v51_v16 = vrot.slane %v14_v14, %v36_v11  ;;  %v69_v22 = vrot.slane %v25_v17, %v36_v11 }
   0xa   :  { %91 = vset.pattern.permute.xlu1 %v99_v2  ;;  %41 = vperm.xlu0 %90, %v11_v0  }
   0xb   :  { %45 = vperm.xlu1 %91, %v12_v3  }
   0xe   :  { %93 = vset.pattern.permute.xlu0 %v98_v1 }
   0xf   :  { %92 = vset.pattern.permute.xlu1 %v98_v1 }
  0x74   :  { %v18_v4 = vpop.permute.xlu0 %17 }
  0x75   :  { %v23_v5 = vmul.f32 %v18_v4, %v11_v0 }
  0x77   :  { %58 = vperm.xlu1 %92, %v23_v5  }
  0x78   :  { %v20_v6 = vpop.permute.xlu0 %19 }
  0x79   :  { %v24_v7 = vmul.f32 %v20_v6, %v12_v3 }
  0x7b   :  { %63 = vperm.xlu0 %93, %v24_v7  }
  0x81   :  { %v28_v9 = vpop.permute.xlu1 %27 }
  0x82   :  { %v38_v20 = vmin.f32 %v28_v9, %v37_v15 }
  0x85   :  { %v32_v13 = vpop.permute.xlu1 %31 }
  0x86   :  { %v39_v24 = vmin.f32 %v32_v13, %v37_v15 }
  0x89   :  { %v42_v18 = vpop.permute.xlu0 %41 }
  0x8a   :  { %v46_v19 = vpop.permute.xlu1 %45  ;;  %v52_v21 = vmin.f32 %v42_v18, %v51_v16 }
  0x8b   :  { %v53_v25 = vmin.f32 %v46_v19, %v51_v16 }
  0x8c   :  { %v54_v26 = vmul.f32 %v52_v21, %v38_v20 }
  0x8d   :  { %v55_v30 = vmul.f32 %v53_v25, %v39_v24 }
  0xf6   :  { %v59_v23 = vpop.permute.xlu1 %58 }
  0xf7   :  { %v70_v27 = vadd.f32 %v69_v22, %v59_v23 }
  0xf9   :  { %v72_v28 = vsub.f32 %v70_v27, %v54_v26 }
  0xfa   :  { %v64_v29 = vpop.permute.xlu0 %63 }
  0xfb   :  { %94 = vrcp.f32 %v72_v28  ;;  %v71_v31 = vadd.f32 %v69_v22, %v64_v29 }
  0xfd   :  { %v73_v32 = vsub.f32 %v71_v31, %v55_v30 }
  0xff   :  { %96 = vrcp.f32 %v73_v32 }
 0x105   :  { %v95_v33 = vpop.eup %94 }
 0x106   :  { %v76_v34 = vmul.f32 %v95_v33, %v54_v26 }
 0x108   :  { %v78_v35 = vadd.f32 1e-16, %v76_v34 }
 0x109   :  { %v97_v36 = vpop.eup %96 }
 0x10a   :  { %80 = vst [vmem:[%s136_s2] sm:$0xff] %v78_v35  ;;  %v77_v37 = vmul.f32 %v97_v36, %v55_v30 }
 0x10c   :  { %v79_v38 = vadd.f32 1e-16, %v77_v37 }
 0x10e   :  { %81 = vst [vmem:[%s136_s2 + $0x8] sm:$0xff] %v79_v38 }

</bundles_post_ra>
